<compile_context>
chip_gen: v5e
topology: v5e:2x2
jax: 0.10.0
libtpu: 0.0.40
codegen_flags: <defaults>
</compile_context>

<pallas_src>
import jax
import jax.numpy as jnp
from jax.experimental import pallas as pl
from jax.experimental.pallas import tpu as pltpu

EPS = 1e-07
LANE = 128
SUBLANE = 8
# Per-buffer block target in BYTES on the wire (dtype-aware).  in + out,
# double-buffered -> ~16 MiB VMEM; vmem_limit_bytes raises v5e's 16 MiB scoped
# default and stays well under v7x's 64 MiB physical / 32 MiB scoped VMEM.
_TARGET_BLOCK_BYTES = 4 * 1024 * 1024
_VMEM_LIMIT_BYTES = 32 * 1024 * 1024


def _make_kernel(gamma, eta):
    # sigmoid(z)*span + eta == 0.5*span*tanh(z/2) + (0.5*span + eta)
    half_span = 0.5 * (float(gamma) - float(eta))
    offset = half_span + float(eta)

    def kernel(params_ref, x_ref, o_ref):
        # params_ref: SMEM [2] -> [1/temperature, log_alpha/temperature]
        inv_temp = params_ref[0]
        alpha_over_temp = params_ref[1]
        # Cast to f32 BEFORE the EPS clip (EPS is zero/subnormal in bf16) and
        # keep all compute in f32.
        x = x_ref[...].astype(jnp.float32)
        x = jnp.clip(x, EPS, 1.0 - EPS)
        # log(x) - log(1-x): two EUP pushes, no divide-refinement on the VALU.
        z = (jnp.log(x) - jnp.log(1.0 - x)) * inv_temp + alpha_over_temp
        # sigmoid in tanh form: one EUP push instead of exp + reciprocal.
        gate = jnp.tanh(0.5 * z) * half_span + offset
        o_ref[...] = jnp.clip(gate, 0.0, 1.0).astype(o_ref.dtype)

    return kernel


def _round_up(x, m):
    return ((x + m - 1) // m) * m


def _choose_layout(n):
    """Pick a lane-dense width (multiple of 128) and the element pad needed so
    n+pad is a multiple of width.  Prefers factorizations that need no pad at
    all (the common, copy-free case)."""
    # Best: rows is also a multiple of 8 (no masked last block anywhere).
    for w in (4096, 2048, 1024, 512, 256, 128):
        if n % (SUBLANE * w) == 0:
            return w, 0
    # Next: no pad; rows ragged -> Pallas masks the last row-block.
    for w in (4096, 2048, 1024, 512, 256, 128):
        if n % w == 0:
            return w, 0
    # Ragged: minimal pad to fill the last 128-lane row.
    return LANE, (-n) % LANE


def _choose_block_rows(rows, width, itemsize):
    if rows <= SUBLANE:
        return rows  # single block equal to the full (possibly <8) row extent
    target_elems = max(_TARGET_BLOCK_BYTES // itemsize, SUBLANE * width)
    br = (target_elems // width) // SUBLANE * SUBLANE
    br = max(SUBLANE, min(br, rows))
    # v7x megacore: keep the grid-block count even so ("parallel",) hands both
    # TensorCores balanced work (a 1- or 3-block grid idles one core).
    nblk = pl.cdiv(rows, br)
    if nblk % 2 == 1:
        cand = max(SUBLANE, min(_round_up(pl.cdiv(rows, nblk + 1), SUBLANE), rows))
        if pl.cdiv(rows, cand) % 2 == 0:
            br = cand
    return br


def hard_concrete_forward(x, log_alpha, temperature, *, gamma=1.05, eta=-0.05):
    """x: any-shape float array (NCHW in the demo). Returns same shape/dtype."""
    orig_shape = x.shape
    orig_dtype = x.dtype
    n = x.size

    width, pad = _choose_layout(n)
    if pad:
        # TODO(synk): drive a masked in-kernel tail (SMEM length scalar)
        # instead of this pad + tail-slice pair; each is an extra HBM pass on
        # ragged inputs.  Aligned inputs (the common case) take the copy-free
        # path below.
        flat = jnp.pad(x.reshape(-1), (0, pad), constant_values=0.5)
    else:
        flat = x.reshape(-1)  # contiguous reshape: no copy
    rows = (n + pad) // width
    x2d = flat.reshape(rows, width)

    block_rows = _choose_block_rows(rows, width, jnp.dtype(orig_dtype).itemsize)

    # Host-side scalar precompute: the per-element divide becomes one mul.
    inv_temp = 1.0 / jnp.asarray(temperature, jnp.float32).reshape(())
    log_alpha_f = jnp.asarray(log_alpha, jnp.float32).reshape(())
    params = jnp.stack([inv_temp, log_alpha_f * inv_temp])

    grid = (pl.cdiv(rows, block_rows),)
    out2d = pl.pallas_call(
        _make_kernel(gamma, eta),
        out_shape=jax.ShapeDtypeStruct((rows, width), orig_dtype),
        grid_spec=pltpu.PrefetchScalarGridSpec(
            num_scalar_prefetch=0,
            grid=grid,
            in_specs=[
                pl.BlockSpec(memory_space=pltpu.MemorySpace.SMEM),  # params
                pl.BlockSpec((block_rows, width), lambda i: (i, 0)),
            ],
            out_specs=pl.BlockSpec((block_rows, width), lambda i: (i, 0)),
        ),
        compiler_params=pltpu.CompilerParams(
            dimension_semantics=("parallel",),
            vmem_limit_bytes=_VMEM_LIMIT_BYTES,
        ),
    )(params, x2d)

    out = out2d.reshape(-1)
    if pad:
        out = out[:n]
    return out.reshape(orig_shape)


def hard_concrete_reference(x, log_alpha, temperature, gamma=1.05, eta=-0.05):
    x = jnp.clip(x.astype(jnp.float32), EPS, 1.0 - EPS)
    gate = jax.nn.sigmoid((jnp.log(x) - jnp.log(1.0 - x) + log_alpha) / temperature)
    gate = gate * (gamma - eta) + eta
    return jnp.clip(gate, 0.0, 1.0)


if __name__ == "__main__":
    key = jax.random.PRNGKey(0)
    # Small NCHW input in (0, 1), consistent with gate-valued inputs.
    x = jax.random.uniform(key, (2, 4, 16, 16), dtype=jnp.float32)

    # Deterministic parameter init matching the module's __init__:
    # log_alpha = zeros(1), temperature = 2/3.
    log_alpha = jnp.float32(0.0)
    temperature = jnp.float32(2.0 / 3.0)

    # f32 path (primary check).
    out = hard_concrete_forward(x, log_alpha, temperature)
    out = jax.block_until_ready(out)
    ref = hard_concrete_reference(x, log_alpha, temperature)
    assert out.shape == x.shape and out.dtype == x.dtype
    assert jnp.max(jnp.abs(out - ref)) < 1e-5

    # bf16 I/O path (native-dtype wire, f32 compute in-kernel).
    x_bf16 = x.astype(jnp.bfloat16)
    out_bf16 = jax.block_until_ready(
        hard_concrete_forward(x_bf16, log_alpha, temperature)
    )
    ref_bf16 = hard_concrete_reference(x_bf16, log_alpha, temperature)
    assert out_bf16.dtype == jnp.bfloat16 and out_bf16.shape == x.shape
    assert jnp.max(jnp.abs(out_bf16.astype(jnp.float32) - ref_bf16)) < 1e-2

    # Ragged-size path (exercises minimal padding, masked last row-block and a
    # 2-block parallel grid).
    x_ragged = jax.random.uniform(
        jax.random.PRNGKey(1), (3, 5, 7, 11), dtype=jnp.float32
    )
    out_ragged = jax.block_until_ready(
        hard_concrete_forward(x_ragged, log_alpha, temperature)
    )
    ref_ragged = hard_concrete_reference(x_ragged, log_alpha, temperature)
    assert out_ragged.shape == x_ragged.shape and out_ragged.dtype == x_ragged.dtype
    assert jnp.max(jnp.abs(out_ragged - ref_ragged)) < 1e-5

    print("KERNEL_OK")
</pallas_src>

<mosaic_0001>
module attributes {stable_mosaic.version = 11 : i64} {
  func.func @kernel(%arg0: i32, %arg1: memref<2xf32, #tpu.memory_space<smem>>, %arg2: memref<8x256xf32, #tpu.memory_space<vmem>>, %arg3: memref<8x256xf32, #tpu.memory_space<vmem>>) attributes {dimension_semantics = [#tpu.dimension_semantics<parallel>], iteration_bounds = array<i64: 1>, scalar_prefetch = 0 : i64, scratch_operands = 0 : i64, tpu.core_type = #tpu.core_type<tc>, window_params = [{transform_indices = @transform_0, window_bounds = array<i64: 2>}, {transform_indices = @transform_1, window_bounds = array<i64: 8, 256>}, {transform_indices = @transform_2, window_bounds = array<i64: 8, 256>}]} {
    %c0 = arith.constant 0 : index
    %0 = memref.load %arg1[%c0] : memref<2xf32, #tpu.memory_space<smem>>
    %c1 = arith.constant 1 : index
    %1 = memref.load %arg1[%c1] : memref<2xf32, #tpu.memory_space<smem>>
    %c0_0 = arith.constant 0 : index
    %c0_1 = arith.constant 0 : index
    %2 = vector.load %arg2[%c0_0, %c0_1] : memref<8x256xf32, #tpu.memory_space<vmem>>, vector<8x256xf32>
    %cst = arith.constant 1.000000e-07 : f32
    %cst_2 = arith.constant 0.99999988 : f32
    %3 = vector.broadcast %cst : f32 to vector<8x256xf32>
    %4 = arith.maximumf %3, %2 : vector<8x256xf32>
    %5 = vector.broadcast %cst_2 : f32 to vector<8x256xf32>
    %6 = arith.minimumf %5, %4 : vector<8x256xf32>
    %7 = math.log %6 : vector<8x256xf32>
    %cst_3 = arith.constant 1.000000e+00 : f32
    %8 = vector.broadcast %cst_3 : f32 to vector<8x256xf32>
    %9 = arith.subf %8, %6 : vector<8x256xf32>
    %10 = math.log %9 : vector<8x256xf32>
    %11 = arith.subf %7, %10 : vector<8x256xf32>
    %12 = vector.broadcast %0 : f32 to vector<8x256xf32>
    %13 = arith.mulf %11, %12 : vector<8x256xf32>
    %14 = vector.broadcast %1 : f32 to vector<8x256xf32>
    %15 = arith.addf %13, %14 : vector<8x256xf32>
    %cst_4 = arith.constant 5.000000e-01 : f32
    %16 = vector.broadcast %cst_4 : f32 to vector<8x256xf32>
    %17 = arith.mulf %16, %15 : vector<8x256xf32>
    %18 = math.tanh %17 : vector<8x256xf32>
    %cst_5 = arith.constant 5.500000e-01 : f32
    %19 = vector.broadcast %cst_5 : f32 to vector<8x256xf32>
    %20 = arith.mulf %18, %19 : vector<8x256xf32>
    %cst_6 = arith.constant 5.000000e-01 : f32
    %21 = vector.broadcast %cst_6 : f32 to vector<8x256xf32>
    %22 = arith.addf %20, %21 : vector<8x256xf32>
    %cst_7 = arith.constant 0.000000e+00 : f32
    %cst_8 = arith.constant 1.000000e+00 : f32
    %23 = vector.broadcast %cst_7 : f32 to vector<8x256xf32>
    %24 = arith.maximumf %23, %22 : vector<8x256xf32>
    %25 = vector.broadcast %cst_8 : f32 to vector<8x256xf32>
    %26 = arith.minimumf %25, %24 : vector<8x256xf32>
    %c0_9 = arith.constant 0 : index
    %c0_10 = arith.constant 0 : index
    %27 = vector.load %arg3[%c0_9, %c0_10] : memref<8x256xf32, #tpu.memory_space<vmem>>, vector<8x256xf32>
    tpu.vector_store %arg3[%c0_9, %c0_10], %26 {strides = array<i32>} : memref<8x256xf32, #tpu.memory_space<vmem>>, vector<8x256xf32>,
    return
  }
  func.func @transform_0(%arg0: i32) -> i32 {
    %c0_i32 = arith.constant 0 : i32
    %c0_i32_0 = arith.constant 0 : i32
    return %c0_i32 : i32
  }
  func.func @transform_1(%arg0: i32) -> (i32, i32) {
    %c0_i32 = arith.constant 0 : i32
    %c0_i32_0 = arith.constant 0 : i32
    return %arg0, %c0_i32 : i32, i32
  }
  func.func @transform_2(%arg0: i32) -> (i32, i32) {
    %c0_i32 = arith.constant 0 : i32
    %c0_i32_0 = arith.constant 0 : i32
    return %arg0, %c0_i32 : i32, i32
  }
}

</mosaic_0001>

<bundles_post_ra>
// kernel: tpu_custom_call.1
= control target key start
LH: loop header
LB: loop body
LE: loop exit
PB: predicated region body
PF: predicated region fallthrough
CT: control target
= control target key end

     0   :  { %7 = vsyncpa [#allocation5], 0  ;;  %s206_s0 = inlined_call_operand.hbm [shape: f32[2], index: 0, kind: input, shape index: {}]   ;;  %s207_s1 = inlined_call_operand.hbm [shape: f32[8,256], index: 1, kind: input, shape index: {}]   ;;  %s208_s2 = inlined_call_operand.hbm [shape: f32[8,256], index: 2, kind: output, shape index: {}]  }
   0x1   :  { %8 = vsyncpa [#allocation3], 0 }
   0x2   :  { %9 = vsyncpa [#allocation4], 0  ;;  %s15_s11 = sshll.u32 %s206_s0, 4  ;;  %s24_s14 = sshll.u32 %s207_s1, 4  ;;  %s16_s11 = int_to_ptr.hbm [resolvable:$true] %s15_s11  ;;  %s25_s14 = int_to_ptr.hbm [resolvable:$true] %s24_s14 }
   0x3   :  { %s179_s15 = smov [#allocation2]   ;;  %s180_s16 = smov [#allocation6]  }
   0x4   :  { %18 = dma.hbm_to_smem %s16_s11, 16, %s179_s15, [#allocation5]  }
   0x5   :  { %s26_s17 = sshll.u32 %s180_s16, 4  ;;  %s27_s17 = int_to_ptr.vmem [resolvable:$true] %s26_s17 }
   0x6   :  { %29 = dma.hbm_to_vmem [thread:$0]  %s25_s14, 256, %s27_s17, [#allocation3]  }
   0x7   :  { %173 = dma.done.wait [#allocation5], 16  }
   0x8   :  { %174 = vsyncadd [#allocation5], 4294967280 }
   0x9   :  { %175 = dma.done.wait [#allocation3], 256  }
   0xa   :  { %176 = vsyncadd [#allocation3], 4294967040 }
   0xb   :  { %38 = sfence }
   0xc   :  { %v41_v0 = vld [vmem:[#allocation6] sm:$0xff]  ;;  %v42_v1 = vld [vmem:[#allocation6 + $0x8] sm:$0xff]  ;;  %s39_s0 = sld [smem:[#allocation2]]  ;;  %s181_s18 = smov [#allocation7]  }
   0xd   :  { %v43_v2 = vmax.f32 %v41_v0, 1e-07  ;;  %v44_v3 = vmax.f32 %v42_v1, 1e-07  ;;  %s97_s1 = sld [smem:[#allocation2 + $0x1]]  ;;  %s84_s19 = sshll.u32 %s181_s18, 4  ;;  %s85_s19 = int_to_ptr.vmem [resolvable:$true] %s84_s19 }
   0xe   :  { %s86_s22 = sshll.u32 %s208_s2, 4  ;;  %s87_s22 = int_to_ptr.hbm [resolvable:$true] %s86_s22 }
   0xf   :  { %v45_v4 = vmin.f32 %v43_v2, 0.9999999  ;;  %v46_v5 = vmin.f32 %v44_v3, 0.9999999 }
  0x11   :  { %101 = vlog2.f32 %v45_v4  ;;  %v51_v6 = vsub.f32 1.0, %v45_v4  ;;  %v52_v7 = vsub.f32 1.0, %v46_v5 }
  0x12   :  { %103 = vlog2.f32 %v46_v5  ;;  %v59_v15 = vstv %s39_s0 }
  0x13   :  { %105 = vlog2.f32 %v51_v6  ;;  %v62_v18 = vstv %s97_s1 }
  0x14   :  { %107 = vlog2.f32 %v52_v7 }
  0x17   :  { %v102_v8 = vpop.eup %101 }
  0x18   :  { %v104_v9 = vpop.eup %103  ;;  %v48_v10 = vmul.f32 0.6931472, %v102_v8 }
  0x19   :  { %v106_v11 = vpop.eup %105  ;;  %v50_v12 = vmul.f32 0.6931472, %v104_v9 }
  0x1a   :  { %v108_v13 = vpop.eup %107  ;;  %v54_v14 = vmul.f32 0.6931472, %v106_v11 }
  0x1b   :  { %v56_v16 = vmul.f32 0.6931472, %v108_v13 }
  0x1c   :  { %v57_v17 = vsub.f32 %v48_v10, %v54_v14 }
  0x1d   :  { %v58_v19 = vsub.f32 %v50_v12, %v56_v16 }
  0x1e   :  { %v60_v20 = vmul.f32 %v59_v15, %v57_v17 }
  0x1f   :  { %v61_v21 = vmul.f32 %v59_v15, %v58_v19 }
  0x20   :  { %v63_v22 = vadd.f32 %v62_v18, %v60_v20 }
  0x21   :  { %v64_v23 = vadd.f32 %v62_v18, %v61_v21 }
  0x22   :  { %v65_v24 = vmul.f32 0.5, %v63_v22 }
  0x23   :  { %v66_v25 = vmul.f32 0.5, %v64_v23 }
  0x24   :  { %109 = vtanh.f32 %v65_v24 }
  0x25   :  { %111 = vtanh.f32 %v66_v25 }
  0x2a   :  { %v110_v26 = vpop.eup %109 }
  0x2b   :  { %v112_v27 = vpop.eup %111  ;;  %v69_v28 = vmul.f32 0.55, %v110_v26 }
  0x2c   :  { %v70_v29 = vmul.f32 0.55, %v112_v27 }
  0x2d   :  { %v71_v30 = vadd.f32 0.5, %v69_v28 }
  0x2e   :  { %v72_v31 = vadd.f32 0.5, %v70_v29 }
  0x2f   :  { %v73_v32 = vmax.f32 %v71_v30, 0.0 }
  0x30   :  { %v74_v33 = vmax.f32 %v72_v31, 0.0 }
  0x31   :  { %v75_v34 = vmin.f32 %v73_v32, 1.0 }
  0x32   :  { %v76_v35 = vmin.f32 %v74_v33, 1.0 }
  0x33   :  { %77 = vst [vmem:[#allocation7] sm:$0xff] %v75_v34 }
  0x34   :  { %78 = vst [vmem:[#allocation7 + $0x8] sm:$0xff] %v76_v35 }
  0x35   :  { %89 = dma.vmem_to_hbm [thread:$0]  %s85_s19, 256, %s87_s22, [#allocation4]  }
  0x36   :  { %177 = dma.done.wait [#allocation4], 256  }
  0x37   :  { %178 = vsyncadd [#allocation4], 4294967040 }
  0x38   :  { %94 = vsyncpa [#allocation3], 1 }
  0x39   :  { %95 = vsyncpa [#allocation4], 1 }
  0x3a   :  { %96 = vsyncpa [#allocation5], 1 }

</bundles_post_ra>
